<compile_context>
chip_gen: v6e
topology: v6e:2x2x1
jax: 0.10.0
libtpu: 0.0.40
codegen_flags: <defaults>
</compile_context>

<pallas_src>
import jax
import jax.numpy as jnp
from jax import lax
from jax.experimental import pallas as pl
from jax.experimental.pallas import tpu as pltpu


_VMEM = pl.BlockSpec(memory_space=pltpu.MemorySpace.VMEM)


# ----------------------------- fused Pallas kernel -----------------------------

def _make_fused_kernel(B, F, O, N, Hp1, hl, n_layers, G, reg):
    """Whole forward in one kernel.

    Ref order: (x, w0_block_0..w0_block_hl, b0, w1, b1, ..., out, coeffT, gpred)
      x:      (B, T, D)   f32
      out:    (B, Hp1, O) f32
      coeffT: (B, G, O)   f32   (= solve(G^T G + reg I, G^T Y) per batch)
      gpred:  (B, Hp1, G) f32
    """
    hl1 = hl + 1
    R = N + Hp1  # base + predict window starts are contiguous: frames 0 .. N+H

    def kernel(*refs):
        x_ref = refs[0]
        w0_block_refs = refs[1:1 + hl1]
        b0_ref = refs[1 + hl1]
        rest = refs[2 + hl1: 2 + hl1 + 2 * (n_layers - 1)]
        out_ref, coeff_ref, gpred_ref = refs[2 + hl1 + 2 * (n_layers - 1):]

        x = x_ref[...]                                        # (B, T, D)

        # ---- constants hoisted out of all loops -----------------------------
        row_iota = lax.broadcasted_iota(jnp.int32, (G, 1), 0)
        col_iota = lax.broadcasted_iota(jnp.int32, (1, G), 1)
        reg_eye = jnp.where(row_iota == col_iota,
                            jnp.float32(reg), jnp.float32(0.0))   # (G, G)
        b0 = b0_ref[...]
        w0s = [r[...] for r in w0_block_refs]
        wbs = [(rest[2 * l][...], rest[2 * l + 1][...])
               for l in range(n_layers - 1)]

        # B = 2: static unroll is fine; switch to a grid axis / fori_loop if B grows.
        for b in range(B):
            xb = x[b]                         # (T, D)
            feats = xb[:, :F]                 # (T, F)
            labels = xb[hl:hl + N, F:]        # (N, O) target = output at last frame of window

            # ---- first Linear folded over the time window (no lane concats) ----
            h = b0 + jnp.dot(feats[0:R, :], w0s[0],
                             preferred_element_type=jnp.float32)
            for t in range(1, hl1):
                h = h + jnp.dot(feats[t:t + R, :], w0s[t],
                                preferred_element_type=jnp.float32)
            h = jnp.maximum(h, 0.0)                            # (R, hidden0)

            # ---- remaining shared MLP trunk -------------------------------------
            for (w, bias) in wbs:
                h = jnp.maximum(
                    jnp.dot(h, w, preferred_element_type=jnp.float32) + bias, 0.0)
            # h: (R, G); rows 0..N-1 = base-learn windows, rows N..N+H = predict.

            g_base = h[:N, :]                  # (N, G)
            g_pred = h[N:, :]                  # (Hp1, G)

            # ---- ridge Gram system -----------------------------------------------
            ata = lax.dot_general(g_base, g_base, (((0,), (0,)), ((), ())),
                                  preferred_element_type=jnp.float32) + reg_eye
            aty = lax.dot_general(g_base, labels, (((0,), (0,)), ((), ())),
                                  preferred_element_type=jnp.float32)   # (G, O)

            # ---- in-kernel SPD solve: Gauss-Jordan elimination (no pivoting) -----
            # A is G^T G + reg*I (SPD), so pivots stay >= reg; 32 tiny vector steps.
            def gj_step(k, carry):
                A, Y = carry
                rmask = row_iota == k          # (G, 1)
                cmask = col_iota == k          # (1, G)
                prow_a = jnp.sum(jnp.where(rmask, A, 0.0), axis=0, keepdims=True)
                prow_y = jnp.sum(jnp.where(rmask, Y, 0.0), axis=0, keepdims=True)
                pivot = jnp.sum(jnp.where(cmask, prow_a, 0.0),
                                axis=1, keepdims=True)          # (1, 1)
                inv_p = 1.0 / pivot
                rA = prow_a * inv_p            # (1, G)
                rY = prow_y * inv_p            # (1, O)
                col = jnp.sum(jnp.where(cmask, A, 0.0),
                              axis=1, keepdims=True)            # (G, 1)
                col = jnp.where(rmask, 0.0, col)
                A = jnp.where(rmask, rA, A - col * rA)
                Y = jnp.where(rmask, rY, Y - col * rY)
                return A, Y

            _, coeffT = lax.fori_loop(0, G, gj_step, (ata, aty))   # (G, O)

            # ---- outputs (single store per tensor per batch) ---------------------
            out_ref[b] = jnp.dot(g_pred, coeffT,
                                 preferred_element_type=jnp.float32)  # (Hp1, O)
            coeff_ref[b] = coeffT                                     # (G, O)
            gpred_ref[b] = g_pred                                     # (Hp1, G)

    return kernel


# ----------------------------- Encoder wrapper -----------------------------

class MetaMLPTimeEmbedEncoderPallas:
    def __init__(self, state_dim, control_dim, output_dim, base_reg,
                 history_len, baselearn_len, future_horizon, hidden_sizes,
                 dropout, key):
        self.state_dim = state_dim
        self.control_dim = control_dim
        self.output_dim = output_dim
        self.base_reg = float(base_reg)
        self.history_len = history_len
        self.baselearn_len = baselearn_len
        self.future_horizon = future_horizon
        self.hidden_sizes = list(hidden_sizes)
        # dropout is inactive at inference time (identity)

        in_dim = (state_dim + control_dim) * (history_len + 1)
        dims = [in_dim] + self.hidden_sizes
        params = []
        for i in range(len(self.hidden_sizes)):
            key, k1, k2 = jax.random.split(key, 3)
            scale = 1.0 / jnp.sqrt(jnp.float32(dims[i]))
            w = jax.random.uniform(k1, (dims[i], dims[i + 1]),
                                   jnp.float32, -scale, scale)
            b = jax.random.uniform(k2, (1, dims[i + 1]),
                                   jnp.float32, -scale, scale)
            params.append((w, b))
        self.mlp_params = params

    def __call__(self, x):
        B, T, D = x.shape
        H = self.future_horizon
        Hp1 = H + 1
        N = self.baselearn_len
        O = self.output_dim
        F = D - O
        hl = self.history_len
        G = self.hidden_sizes[-1]
        n_layers = len(self.mlp_params)

        # Split W0 into per-time-tap blocks outside the kernel (free layout prep).
        w0, b0 = self.mlp_params[0]
        w0_blocks = [w0[t * F:(t + 1) * F, :] for t in range(hl + 1)]
        flat = [*w0_blocks, b0]
        for w, b in self.mlp_params[1:]:
            flat += [w, b]

        kernel = _make_fused_kernel(B, F, O, N, Hp1, hl, n_layers, G,
                                    self.base_reg)
        out, coeffT, gpred = pl.pallas_call(
            kernel,
            out_shape=(jax.ShapeDtypeStruct((B, Hp1, O), jnp.float32),
                       jax.ShapeDtypeStruct((B, G, O), jnp.float32),
                       jax.ShapeDtypeStruct((B, Hp1, G), jnp.float32)),
            in_specs=[_VMEM] * (1 + len(flat)),
            out_specs=(_VMEM, _VMEM, _VMEM),
        )(x, *flat)

        # Wrapper-side layout plumbing only (no compute).
        batch_coeff = jnp.transpose(coeffT, (0, 2, 1))              # (B, O, G)
        coeff_predict = jnp.broadcast_to(batch_coeff[:, None, :, :],
                                         (B, Hp1, O, G))
        return out, coeff_predict, gpred[..., None]


# ----------------------------- pure-JAX reference -----------------------------

def reference_forward(x, params, *, output_dim, baselearn_len, future_horizon,
                      base_reg):
    """Mirrors the PyTorch module (explicit windows + linear solve)."""
    B, T, D = x.shape
    O = output_dim
    F = D - O
    H = future_horizon
    N = baselearn_len

    def mlp(z):
        h = z
        for w, b in params:
            h = jnp.maximum(h @ w + b, 0.0)
        return h

    def get_mlp_outputs(x_mlpin, rollout_len):
        mlpin_len = x_mlpin.shape[1] - rollout_len + 1
        gs = [mlp(x_mlpin[:, i:i + mlpin_len, :].reshape(B, -1))
              for i in range(rollout_len)]
        return jnp.stack(gs, axis=1)            # (B, rollout_len, G)

    x_pastcurrent = x[:, :T - H, :]
    x_mlpin = x_pastcurrent[:, :-1, :F]
    baselearn_gvec = get_mlp_outputs(x_mlpin, N)                    # (B, N, G)
    x_baselearn = x_pastcurrent[:, -N - 1:-1, :]
    labels = x_baselearn[:, :, F:]                                  # (B, N, O)
    Gd = baselearn_gvec.shape[-1]
    ata = jnp.einsum('bng,bnh->bgh', baselearn_gvec, baselearn_gvec) \
        + base_reg * jnp.eye(Gd, dtype=jnp.float32)[None]
    aty = jnp.einsum('bng,bno->bgo', baselearn_gvec, labels)
    coeffT = jnp.linalg.solve(ata, aty)                             # (B, G, O)
    batch_coeff = jnp.transpose(coeffT, (0, 2, 1))                  # (B, O, G)
    x_predict = x[:, N:, :]
    gvec_predict = get_mlp_outputs(x_predict[:, :, :F], H + 1)      # (B, H+1, G)
    out = jnp.einsum('bqg,bgo->bqo', gvec_predict, coeffT)
    return out, batch_coeff, gvec_predict


# ----------------------------------- main -----------------------------------

if __name__ == "__main__":
    state_dim, control_dim, output_dim = 3, 2, 2
    history_len, baselearn_len, future_horizon = 1, 8, 4
    hidden_sizes = [32, 32]
    base_reg = 0.1
    dropout = 0.1
    B = 2
    T = history_len + baselearn_len + 1 + future_horizon            # 14
    D = state_dim + control_dim + output_dim                        # 7

    key = jax.random.PRNGKey(0)
    kx, kp = jax.random.split(key)
    x = jax.random.normal(kx, (B, T, D), dtype=jnp.float32)

    enc = MetaMLPTimeEmbedEncoderPallas(
        state_dim, control_dim, output_dim, base_reg,
        history_len, baselearn_len, future_horizon, hidden_sizes,
        dropout, key=kp)

    fwd = jax.jit(enc.__call__)            # one dispatch: a single fused kernel
    out, coeff_predict, gvec_predict = fwd(x)
    jax.block_until_ready((out, coeff_predict, gvec_predict))

    assert out.shape == (B, future_horizon + 1, output_dim)
    assert coeff_predict.shape == (B, future_horizon + 1, output_dim,
                                   hidden_sizes[-1])
    assert gvec_predict.shape == (B, future_horizon + 1, hidden_sizes[-1], 1)
    assert bool(jnp.all(jnp.isfinite(out)))

    # correctness check against a straightforward JAX mirror of the PyTorch code
    with jax.default_matmul_precision("highest"):
        ref_out, ref_coeff, ref_gvec = reference_forward(
            x, enc.mlp_params, output_dim=output_dim,
            baselearn_len=baselearn_len, future_horizon=future_horizon,
            base_reg=base_reg)
    assert bool(jnp.allclose(gvec_predict[..., 0], ref_gvec,
                             rtol=1e-2, atol=1e-2))
    assert bool(jnp.allclose(coeff_predict[:, 0], ref_coeff,
                             rtol=1e-2, atol=1e-2))
    assert bool(jnp.allclose(out, ref_out, rtol=1e-2, atol=1e-2))

    print("KERNEL_OK")
</pallas_src>

<mosaic_0001>
module attributes {stable_mosaic.version = 11 : i64} {
  func.func @kernel(%arg0: memref<2x14x7xf32, #tpu.memory_space<vmem>>, %arg1: memref<5x32xf32, #tpu.memory_space<vmem>>, %arg2: memref<5x32xf32, #tpu.memory_space<vmem>>, %arg3: memref<1x32xf32, #tpu.memory_space<vmem>>, %arg4: memref<32x32xf32, #tpu.memory_space<vmem>>, %arg5: memref<1x32xf32, #tpu.memory_space<vmem>>, %arg6: memref<2x5x2xf32, #tpu.memory_space<vmem>>, %arg7: memref<2x32x2xf32, #tpu.memory_space<vmem>>, %arg8: memref<2x5x32xf32, #tpu.memory_space<vmem>>) attributes {dimension_semantics = [], scalar_prefetch = 0 : i64, scratch_operands = 0 : i64, tpu.core_type = #tpu.core_type<tc>} {
    %c0 = arith.constant 0 : index
    %c0_0 = arith.constant 0 : index
    %c0_1 = arith.constant 0 : index
    %0 = vector.load %arg0[%c0, %c0_0, %c0_1] : memref<2x14x7xf32, #tpu.memory_space<vmem>>, vector<2x14x7xf32>
    %1 = tpu.iota {dimensions = array<i32: 0>} : vector<32x1xi32>
    %2 = tpu.iota {dimensions = array<i32: 1>} : vector<1x32xi32>
    %3 = vector.broadcast %1 : vector<32x1xi32> to vector<32x32xi32>
    %4 = vector.broadcast %2 : vector<1x32xi32> to vector<32x32xi32>
    %5 = arith.cmpi eq, %3, %4 : vector<32x32xi32>
    %cst = arith.constant 1.000000e-01 : f32
    %cst_2 = arith.constant 0.000000e+00 : f32
    %6 = vector.broadcast %cst : f32 to vector<32x32xf32>
    %7 = vector.broadcast %cst_2 : f32 to vector<32x32xf32>
    %8 = arith.select %5, %6, %7 : vector<32x32xi1>, vector<32x32xf32>
    %c0_3 = arith.constant 0 : index
    %c0_4 = arith.constant 0 : index
    %9 = vector.load %arg3[%c0_3, %c0_4] : memref<1x32xf32, #tpu.memory_space<vmem>>, vector<1x32xf32>
    %c0_5 = arith.constant 0 : index
    %c0_6 = arith.constant 0 : index
    %10 = vector.load %arg1[%c0_5, %c0_6] : memref<5x32xf32, #tpu.memory_space<vmem>>, vector<5x32xf32>
    %c0_7 = arith.constant 0 : index
    %c0_8 = arith.constant 0 : index
    %11 = vector.load %arg2[%c0_7, %c0_8] : memref<5x32xf32, #tpu.memory_space<vmem>>, vector<5x32xf32>
    %c0_9 = arith.constant 0 : index
    %c0_10 = arith.constant 0 : index
    %12 = vector.load %arg4[%c0_9, %c0_10] : memref<32x32xf32, #tpu.memory_space<vmem>>, vector<32x32xf32>
    %c0_11 = arith.constant 0 : index
    %c0_12 = arith.constant 0 : index
    %13 = vector.load %arg5[%c0_11, %c0_12] : memref<1x32xf32, #tpu.memory_space<vmem>>, vector<1x32xf32>
    %14 = vector.extract_strided_slice %0 {offsets = [0, 0, 0], sizes = [1, 14, 7], strides = [1, 1, 1]} : vector<2x14x7xf32> to vector<1x14x7xf32>
    %15 = vector.shape_cast %14 : vector<1x14x7xf32> to vector<14x7xf32>
    %16 = vector.extract_strided_slice %15 {offsets = [0, 0], sizes = [14, 5], strides = [1, 1]} : vector<14x7xf32> to vector<14x5xf32>
    %17 = vector.extract_strided_slice %15 {offsets = [1, 5], sizes = [8, 2], strides = [1, 1]} : vector<14x7xf32> to vector<8x2xf32>
    %18 = vector.extract_strided_slice %16 {offsets = [0, 0], sizes = [13, 5], strides = [1, 1]} : vector<14x5xf32> to vector<13x5xf32>
    %cst_13 = arith.constant dense<0.000000e+00> : vector<13x32xf32>
    %19 = tpu.matmul %18, %10, %cst_13 {dimension_numbers = #tpu.dot_dimension_numbers<[1], [0], [0], [1], [0, 0, 1, 1], [], []>} : vector<13x5xf32>, vector<5x32xf32>, vector<13x32xf32> -> vector<13x32xf32>
    %20 = vector.broadcast %9 : vector<1x32xf32> to vector<13x32xf32>
    %21 = arith.addf %20, %19 : vector<13x32xf32>
    %22 = vector.extract_strided_slice %16 {offsets = [1, 0], sizes = [13, 5], strides = [1, 1]} : vector<14x5xf32> to vector<13x5xf32>
    %cst_14 = arith.constant dense<0.000000e+00> : vector<13x32xf32>
    %23 = tpu.matmul %22, %11, %cst_14 {dimension_numbers = #tpu.dot_dimension_numbers<[1], [0], [0], [1], [0, 0, 1, 1], [], []>} : vector<13x5xf32>, vector<5x32xf32>, vector<13x32xf32> -> vector<13x32xf32>
    %24 = arith.addf %21, %23 : vector<13x32xf32>
    %cst_15 = arith.constant 0.000000e+00 : f32
    %25 = vector.broadcast %cst_15 : f32 to vector<13x32xf32>
    %26 = arith.maximumf %24, %25 : vector<13x32xf32>
    %cst_16 = arith.constant dense<0.000000e+00> : vector<13x32xf32>
    %27 = tpu.matmul %26, %12, %cst_16 {dimension_numbers = #tpu.dot_dimension_numbers<[1], [0], [0], [1], [0, 0, 1, 1], [], []>} : vector<13x32xf32>, vector<32x32xf32>, vector<13x32xf32> -> vector<13x32xf32>
    %28 = vector.broadcast %13 : vector<1x32xf32> to vector<13x32xf32>
    %29 = arith.addf %27, %28 : vector<13x32xf32>
    %cst_17 = arith.constant 0.000000e+00 : f32
    %30 = vector.broadcast %cst_17 : f32 to vector<13x32xf32>
    %31 = arith.maximumf %29, %30 : vector<13x32xf32>
    %32 = vector.extract_strided_slice %31 {offsets = [0, 0], sizes = [8, 32], strides = [1, 1]} : vector<13x32xf32> to vector<8x32xf32>
    %33 = vector.extract_strided_slice %31 {offsets = [8, 0], sizes = [5, 32], strides = [1, 1]} : vector<13x32xf32> to vector<5x32xf32>
    %cst_18 = arith.constant dense<0.000000e+00> : vector<32x32xf32>
    %34 = tpu.matmul %32, %32, %cst_18 {dimension_numbers = #tpu.dot_dimension_numbers<[0], [0], [1], [1], [0, 1, 1, 1], [], []>} : vector<8x32xf32>, vector<8x32xf32>, vector<32x32xf32> -> vector<32x32xf32>
    %35 = arith.addf %34, %8 : vector<32x32xf32>
    %cst_19 = arith.constant dense<0.000000e+00> : vector<32x2xf32>
    %36 = tpu.matmul %32, %17, %cst_19 {dimension_numbers = #tpu.dot_dimension_numbers<[0], [0], [1], [1], [0, 1, 1, 1], [], []>} : vector<8x32xf32>, vector<8x2xf32>, vector<32x2xf32> -> vector<32x2xf32>
    %c0_i32 = arith.constant 0 : i32
    %c32_i32 = arith.constant 32 : i32
    %37 = arith.addi %c0_i32, %c32_i32 : i32
    %c1_i32 = arith.constant 1 : i32
    %38:2 = scf.for %arg9 = %c0_i32 to %37 step %c1_i32 iter_args(%arg10 = %35, %arg11 = %36) -> (vector<32x32xf32>, vector<32x2xf32>)  : i32 {
      %84 = vector.broadcast %arg9 : i32 to vector<32x1xi32>
      %85 = arith.cmpi eq, %1, %84 : vector<32x1xi32>
      %86 = vector.broadcast %arg9 : i32 to vector<1x32xi32>
      %87 = arith.cmpi eq, %2, %86 : vector<1x32xi32>
      %cst_51 = arith.constant 0.000000e+00 : f32
      %88 = vector.shape_cast %85 : vector<32x1xi1> to vector<32x1xi1>
      %89 = vector.broadcast %88 : vector<32x1xi1> to vector<32x32xi1>
      %90 = vector.broadcast %cst_51 : f32 to vector<32x32xf32>
      %91 = arith.select %89, %arg10, %90 : vector<32x32xi1>, vector<32x32xf32>
      %cst_52 = arith.constant dense<0.000000e+00> : vector<32xf32>
      %92 = vector.multi_reduction <add>, %91, %cst_52 [0] : vector<32x32xf32> to vector<32xf32>
      %93 = vector.shape_cast %92 : vector<32xf32> to vector<1x32xf32>
      %cst_53 = arith.constant 0.000000e+00 : f32
      %94 = vector.shape_cast %85 : vector<32x1xi1> to vector<32x1xi1>
      %95 = vector.broadcast %94 : vector<32x1xi1> to vector<32x2xi1>
      %96 = vector.broadcast %cst_53 : f32 to vector<32x2xf32>
      %97 = arith.select %95, %arg11, %96 : vector<32x2xi1>, vector<32x2xf32>
      %cst_54 = arith.constant dense<0.000000e+00> : vector<2xf32>
      %98 = vector.multi_reduction <add>, %97, %cst_54 [0] : vector<32x2xf32> to vector<2xf32>
      %99 = vector.shape_cast %98 : vector<2xf32> to vector<1x2xf32>
      %cst_55 = arith.constant 0.000000e+00 : f32
      %100 = vector.broadcast %cst_55 : f32 to vector<1x32xf32>
      %101 = arith.select %87, %93, %100 : vector<1x32xi1>, vector<1x32xf32>
      %cst_56 = arith.constant dense<0.000000e+00> : vector<1xf32>
      %102 = vector.multi_reduction <add>, %101, %cst_56 [1] : vector<1x32xf32> to vector<1xf32>
      %103 = vector.shape_cast %102 : vector<1xf32> to vector<1x1xf32>
      %cst_57 = arith.constant 1.000000e+00 : f32
      %104 = vector.broadcast %cst_57 : f32 to vector<1x1xf32>
      %105 = arith.divf %104, %103 : vector<1x1xf32>
      %106 = vector.broadcast %105 : vector<1x1xf32> to vector<1x32xf32>
      %107 = arith.mulf %93, %106 : vector<1x32xf32>
      %108 = vector.broadcast %105 : vector<1x1xf32> to vector<1x2xf32>
      %109 = arith.mulf %99, %108 : vector<1x2xf32>
      %cst_58 = arith.constant 0.000000e+00 : f32
      %110 = vector.shape_cast %87 : vector<1x32xi1> to vector<1x32xi1>
      %111 = vector.broadcast %110 : vector<1x32xi1> to vector<32x32xi1>
      %112 = vector.broadcast %cst_58 : f32 to vector<32x32xf32>
      %113 = arith.select %111, %arg10, %112 : vector<32x32xi1>, vector<32x32xf32>
      %cst_59 = arith.constant dense<0.000000e+00> : vector<32xf32>
      %114 = vector.multi_reduction <add>, %113, %cst_59 [1] : vector<32x32xf32> to vector<32xf32>
      %115 = vector.shape_cast %114 : vector<32xf32> to vector<32x1xf32>
      %cst_60 = arith.constant 0.000000e+00 : f32
      %116 = vector.broadcast %cst_60 : f32 to vector<32x1xf32>
      %117 = arith.select %85, %116, %115 : vector<32x1xi1>, vector<32x1xf32>
      %118 = vector.broadcast %117 : vector<32x1xf32> to vector<32x32xf32>
      %119 = vector.broadcast %107 : vector<1x32xf32> to vector<32x32xf32>
      %120 = arith.mulf %118, %119 : vector<32x32xf32>
      %121 = arith.subf %arg10, %120 : vector<32x32xf32>
      %122 = vector.shape_cast %85 : vector<32x1xi1> to vector<32x1xi1>
      %123 = vector.broadcast %122 : vector<32x1xi1> to vector<32x32xi1>
      %124 = vector.shape_cast %107 : vector<1x32xf32> to vector<1x32xf32>
      %125 = vector.broadcast %124 : vector<1x32xf32> to vector<32x32xf32>
      %126 = arith.select %123, %125, %121 : vector<32x32xi1>, vector<32x32xf32>
      %127 = vector.broadcast %117 : vector<32x1xf32> to vector<32x2xf32>
      %128 = vector.broadcast %109 : vector<1x2xf32> to vector<32x2xf32>
      %129 = arith.mulf %127, %128 : vector<32x2xf32>
      %130 = arith.subf %arg11, %129 : vector<32x2xf32>
      %131 = vector.shape_cast %85 : vector<32x1xi1> to vector<32x1xi1>
      %132 = vector.broadcast %131 : vector<32x1xi1> to vector<32x2xi1>
      %133 = vector.shape_cast %109 : vector<1x2xf32> to vector<1x2xf32>
      %134 = vector.broadcast %133 : vector<1x2xf32> to vector<32x2xf32>
      %135 = arith.select %132, %134, %130 : vector<32x2xi1>, vector<32x2xf32>
      scf.yield %126, %135 : vector<32x32xf32>, vector<32x2xf32>
    }
    %c32_i32_20 = arith.constant 32 : i32
    %cst_21 = arith.constant dense<0.000000e+00> : vector<5x2xf32>
    %39 = tpu.matmul %33, %38#1, %cst_21 {dimension_numbers = #tpu.dot_dimension_numbers<[1], [0], [0], [1], [0, 0, 1, 1], [], []>} : vector<5x32xf32>, vector<32x2xf32>, vector<5x2xf32> -> vector<5x2xf32>
    %c0_22 = arith.constant 0 : index
    %c0_23 = arith.constant 0 : index
    %c0_24 = arith.constant 0 : index
    %40 = vector.load %arg6[%c0_22, %c0_23, %c0_24] : memref<2x5x2xf32, #tpu.memory_space<vmem>>, vector<1x5x2xf32>
    %41 = vector.shape_cast %40 : vector<1x5x2xf32> to vector<5x2xf32>
    %42 = vector.shape_cast %39 : vector<5x2xf32> to vector<1x5x2xf32>
    tpu.vector_store %arg6[%c0_22, %c0_23, %c0_24], %42 {strides = array<i32>} : memref<2x5x2xf32, #tpu.memory_space<vmem>>, vector<1x5x2xf32>,
    %c0_25 = arith.constant 0 : index
    %c0_26 = arith.constant 0 : index
    %c0_27 = arith.constant 0 : index
    %43 = vector.load %arg7[%c0_25, %c0_26, %c0_27] : memref<2x32x2xf32, #tpu.memory_space<vmem>>, vector<1x32x2xf32>
    %44 = vector.shape_cast %43 : vector<1x32x2xf32> to vector<32x2xf32>
    %45 = vector.shape_cast %38#1 : vector<32x2xf32> to vector<1x32x2xf32>
    tpu.vector_store %arg7[%c0_25, %c0_26, %c0_27], %45 {strides = array<i32>} : memref<2x32x2xf32, #tpu.memory_space<vmem>>, vector<1x32x2xf32>,
    %c0_28 = arith.constant 0 : index
    %c0_29 = arith.constant 0 : index
    %c0_30 = arith.constant 0 : index
    %46 = vector.load %arg8[%c0_28, %c0_29, %c0_30] : memref<2x5x32xf32, #tpu.memory_space<vmem>>, vector<1x5x32xf32>
    %47 = vector.shape_cast %46 : vector<1x5x32xf32> to vector<5x32xf32>
    %48 = vector.shape_cast %33 : vector<5x32xf32> to vector<1x5x32xf32>
    tpu.vector_store %arg8[%c0_28, %c0_29, %c0_30], %48 {strides = array<i32>} : memref<2x5x32xf32, #tpu.memory_space<vmem>>, vector<1x5x32xf32>,
    %49 = vector.extract_strided_slice %0 {offsets = [1, 0, 0], sizes = [1, 14, 7], strides = [1, 1, 1]} : vector<2x14x7xf32> to vector<1x14x7xf32>
    %50 = vector.shape_cast %49 : vector<1x14x7xf32> to vector<14x7xf32>
    %51 = vector.extract_strided_slice %50 {offsets = [0, 0], sizes = [14, 5], strides = [1, 1]} : vector<14x7xf32> to vector<14x5xf32>
    %52 = vector.extract_strided_slice %50 {offsets = [1, 5], sizes = [8, 2], strides = [1, 1]} : vector<14x7xf32> to vector<8x2xf32>
    %53 = vector.extract_strided_slice %51 {offsets = [0, 0], sizes = [13, 5], strides = [1, 1]} : vector<14x5xf32> to vector<13x5xf32>
    %cst_31 = arith.constant dense<0.000000e+00> : vector<13x32xf32>
    %54 = tpu.matmul %53, %10, %cst_31 {dimension_numbers = #tpu.dot_dimension_numbers<[1], [0], [0], [1], [0, 0, 1, 1], [], []>} : vector<13x5xf32>, vector<5x32xf32>, vector<13x32xf32> -> vector<13x32xf32>
    %55 = vector.broadcast %9 : vector<1x32xf32> to vector<13x32xf32>
    %56 = arith.addf %55, %54 : vector<13x32xf32>
    %57 = vector.extract_strided_slice %51 {offsets = [1, 0], sizes = [13, 5], strides = [1, 1]} : vector<14x5xf32> to vector<13x5xf32>
    %cst_32 = arith.constant dense<0.000000e+00> : vector<13x32xf32>
    %58 = tpu.matmul %57, %11, %cst_32 {dimension_numbers = #tpu.dot_dimension_numbers<[1], [0], [0], [1], [0, 0, 1, 1], [], []>} : vector<13x5xf32>, vector<5x32xf32>, vector<13x32xf32> -> vector<13x32xf32>
    %59 = arith.addf %56, %58 : vector<13x32xf32>
    %cst_33 = arith.constant 0.000000e+00 : f32
    %60 = vector.broadcast %cst_33 : f32 to vector<13x32xf32>
    %61 = arith.maximumf %59, %60 : vector<13x32xf32>
    %cst_34 = arith.constant dense<0.000000e+00> : vector<13x32xf32>
    %62 = tpu.matmul %61, %12, %cst_34 {dimension_numbers = #tpu.dot_dimension_numbers<[1], [0], [0], [1], [0, 0, 1, 1], [], []>} : vector<13x32xf32>, vector<32x32xf32>, vector<13x32xf32> -> vector<13x32xf32>
    %63 = vector.broadcast %13 : vector<1x32xf32> to vector<13x32xf32>
    %64 = arith.addf %62, %63 : vector<13x32xf32>
    %cst_35 = arith.constant 0.000000e+00 : f32
    %65 = vector.broadcast %cst_35 : f32 to vector<13x32xf32>
    %66 = arith.maximumf %64, %65 : vector<13x32xf32>
    %67 = vector.extract_strided_slice %66 {offsets = [0, 0], sizes = [8, 32], strides = [1, 1]} : vector<13x32xf32> to vector<8x32xf32>
    %68 = vector.extract_strided_slice %66 {offsets = [8, 0], sizes = [5, 32], strides = [1, 1]} : vector<13x32xf32> to vector<5x32xf32>
    %cst_36 = arith.constant dense<0.000000e+00> : vector<32x32xf32>
    %69 = tpu.matmul %67, %67, %cst_36 {dimension_numbers = #tpu.dot_dimension_numbers<[0], [0], [1], [1], [0, 1, 1, 1], [], []>} : vector<8x32xf32>, vector<8x32xf32>, vector<32x32xf32> -> vector<32x32xf32>
    %70 = arith.addf %69, %8 : vector<32x32xf32>
    %cst_37 = arith.constant dense<0.000000e+00> : vector<32x2xf32>
    %71 = tpu.matmul %67, %52, %cst_37 {dimension_numbers = #tpu.dot_dimension_numbers<[0], [0], [1], [1], [0, 1, 1, 1], [], []>} : vector<8x32xf32>, vector<8x2xf32>, vector<32x2xf32> -> vector<32x2xf32>
    %c0_i32_38 = arith.constant 0 : i32
    %c32_i32_39 = arith.constant 32 : i32
    %72 = arith.addi %c0_i32_38, %c32_i32_39 : i32
    %c1_i32_40 = arith.constant 1 : i32
    %73:2 = scf.for %arg9 = %c0_i32_38 to %72 step %c1_i32_40 iter_args(%arg10 = %70, %arg11 = %71) -> (vector<32x32xf32>, vector<32x2xf32>)  : i32 {
      %84 = vector.broadcast %arg9 : i32 to vector<32x1xi32>
      %85 = arith.cmpi eq, %1, %84 : vector<32x1xi32>
      %86 = vector.broadcast %arg9 : i32 to vector<1x32xi32>
      %87 = arith.cmpi eq, %2, %86 : vector<1x32xi32>
      %cst_51 = arith.constant 0.000000e+00 : f32
      %88 = vector.shape_cast %85 : vector<32x1xi1> to vector<32x1xi1>
      %89 = vector.broadcast %88 : vector<32x1xi1> to vector<32x32xi1>
      %90 = vector.broadcast %cst_51 : f32 to vector<32x32xf32>
      %91 = arith.select %89, %arg10, %90 : vector<32x32xi1>, vector<32x32xf32>
      %cst_52 = arith.constant dense<0.000000e+00> : vector<32xf32>
      %92 = vector.multi_reduction <add>, %91, %cst_52 [0] : vector<32x32xf32> to vector<32xf32>
      %93 = vector.shape_cast %92 : vector<32xf32> to vector<1x32xf32>
      %cst_53 = arith.constant 0.000000e+00 : f32
      %94 = vector.shape_cast %85 : vector<32x1xi1> to vector<32x1xi1>
      %95 = vector.broadcast %94 : vector<32x1xi1> to vector<32x2xi1>
      %96 = vector.broadcast %cst_53 : f32 to vector<32x2xf32>
      %97 = arith.select %95, %arg11, %96 : vector<32x2xi1>, vector<32x2xf32>
      %cst_54 = arith.constant dense<0.000000e+00> : vector<2xf32>
      %98 = vector.multi_reduction <add>, %97, %cst_54 [0] : vector<32x2xf32> to vector<2xf32>
      %99 = vector.shape_cast %98 : vector<2xf32> to vector<1x2xf32>
      %cst_55 = arith.constant 0.000000e+00 : f32
      %100 = vector.broadcast %cst_55 : f32 to vector<1x32xf32>
      %101 = arith.select %87, %93, %100 : vector<1x32xi1>, vector<1x32xf32>
      %cst_56 = arith.constant dense<0.000000e+00> : vector<1xf32>
      %102 = vector.multi_reduction <add>, %101, %cst_56 [1] : vector<1x32xf32> to vector<1xf32>
      %103 = vector.shape_cast %102 : vector<1xf32> to vector<1x1xf32>
      %cst_57 = arith.constant 1.000000e+00 : f32
      %104 = vector.broadcast %cst_57 : f32 to vector<1x1xf32>
      %105 = arith.divf %104, %103 : vector<1x1xf32>
      %106 = vector.broadcast %105 : vector<1x1xf32> to vector<1x32xf32>
      %107 = arith.mulf %93, %106 : vector<1x32xf32>
      %108 = vector.broadcast %105 : vector<1x1xf32> to vector<1x2xf32>
      %109 = arith.mulf %99, %108 : vector<1x2xf32>
      %cst_58 = arith.constant 0.000000e+00 : f32
      %110 = vector.shape_cast %87 : vector<1x32xi1> to vector<1x32xi1>
      %111 = vector.broadcast %110 : vector<1x32xi1> to vector<32x32xi1>
      %112 = vector.broadcast %cst_58 : f32 to vector<32x32xf32>
      %113 = arith.select %111, %arg10, %112 : vector<32x32xi1>, vector<32x32xf32>
      %cst_59 = arith.constant dense<0.000000e+00> : vector<32xf32>
      %114 = vector.multi_reduction <add>, %113, %cst_59 [1] : vector<32x32xf32> to vector<32xf32>
      %115 = vector.shape_cast %114 : vector<32xf32> to vector<32x1xf32>
      %cst_60 = arith.constant 0.000000e+00 : f32
      %116 = vector.broadcast %cst_60 : f32 to vector<32x1xf32>
      %117 = arith.select %85, %116, %115 : vector<32x1xi1>, vector<32x1xf32>
      %118 = vector.broadcast %117 : vector<32x1xf32> to vector<32x32xf32>
      %119 = vector.broadcast %107 : vector<1x32xf32> to vector<32x32xf32>
      %120 = arith.mulf %118, %119 : vector<32x32xf32>
      %121 = arith.subf %arg10, %120 : vector<32x32xf32>
      %122 = vector.shape_cast %85 : vector<32x1xi1> to vector<32x1xi1>
      %123 = vector.broadcast %122 : vector<32x1xi1> to vector<32x32xi1>
      %124 = vector.shape_cast %107 : vector<1x32xf32> to vector<1x32xf32>
      %125 = vector.broadcast %124 : vector<1x32xf32> to vector<32x32xf32>
      %126 = arith.select %123, %125, %121 : vector<32x32xi1>, vector<32x32xf32>
      %127 = vector.broadcast %117 : vector<32x1xf32> to vector<32x2xf32>
      %128 = vector.broadcast %109 : vector<1x2xf32> to vector<32x2xf32>
      %129 = arith.mulf %127, %128 : vector<32x2xf32>
      %130 = arith.subf %arg11, %129 : vector<32x2xf32>
      %131 = vector.shape_cast %85 : vector<32x1xi1> to vector<32x1xi1>
      %132 = vector.broadcast %131 : vector<32x1xi1> to vector<32x2xi1>
      %133 = vector.shape_cast %109 : vector<1x2xf32> to vector<1x2xf32>
      %134 = vector.broadcast %133 : vector<1x2xf32> to vector<32x2xf32>
      %135 = arith.select %132, %134, %130 : vector<32x2xi1>, vector<32x2xf32>
      scf.yield %126, %135 : vector<32x32xf32>, vector<32x2xf32>
    }
    %c32_i32_41 = arith.constant 32 : i32
    %cst_42 = arith.constant dense<0.000000e+00> : vector<5x2xf32>
    %74 = tpu.matmul %68, %73#1, %cst_42 {dimension_numbers = #tpu.dot_dimension_numbers<[1], [0], [0], [1], [0, 0, 1, 1], [], []>} : vector<5x32xf32>, vector<32x2xf32>, vector<5x2xf32> -> vector<5x2xf32>
    %c1 = arith.constant 1 : index
    %c0_43 = arith.constant 0 : index
    %c0_44 = arith.constant 0 : index
    %75 = vector.load %arg6[%c1, %c0_43, %c0_44] : memref<2x5x2xf32, #tpu.memory_space<vmem>>, vector<1x5x2xf32>
    %76 = vector.shape_cast %75 : vector<1x5x2xf32> to vector<5x2xf32>
    %77 = vector.shape_cast %74 : vector<5x2xf32> to vector<1x5x2xf32>
    tpu.vector_store %arg6[%c1, %c0_43, %c0_44], %77 {strides = array<i32>} : memref<2x5x2xf32, #tpu.memory_space<vmem>>, vector<1x5x2xf32>,
    %c1_45 = arith.constant 1 : index
    %c0_46 = arith.constant 0 : index
    %c0_47 = arith.constant 0 : index
    %78 = vector.load %arg7[%c1_45, %c0_46, %c0_47] : memref<2x32x2xf32, #tpu.memory_space<vmem>>, vector<1x32x2xf32>
    %79 = vector.shape_cast %78 : vector<1x32x2xf32> to vector<32x2xf32>
    %80 = vector.shape_cast %73#1 : vector<32x2xf32> to vector<1x32x2xf32>
    tpu.vector_store %arg7[%c1_45, %c0_46, %c0_47], %80 {strides = array<i32>} : memref<2x32x2xf32, #tpu.memory_space<vmem>>, vector<1x32x2xf32>,
    %c1_48 = arith.constant 1 : index
    %c0_49 = arith.constant 0 : index
    %c0_50 = arith.constant 0 : index
    %81 = vector.load %arg8[%c1_48, %c0_49, %c0_50] : memref<2x5x32xf32, #tpu.memory_space<vmem>>, vector<1x5x32xf32>
    %82 = vector.shape_cast %81 : vector<1x5x32xf32> to vector<5x32xf32>
    %83 = vector.shape_cast %68 : vector<5x32xf32> to vector<1x5x32xf32>
    tpu.vector_store %arg8[%c1_48, %c0_49, %c0_50], %83 {strides = array<i32>} : memref<2x5x32xf32, #tpu.memory_space<vmem>>, vector<1x5x32xf32>,
    return
  }
}

</mosaic_0001>

<bundles_post_ra>
// kernel: a_call__.1
= control target key start
LH: loop header
LB: loop body
LE: loop exit
PB: predicated region body
PF: predicated region fallthrough
CT: control target
= control target key end

     0   :  { %14 = vsyncpa [#allocation3], 0  ;;  %s2004_s27 = smov [#allocation2]   ;;  %s2648_s0 = inlined_call_operand.vmem [shape: f32[2,14,7], index: 0, kind: input, shape index: {}]   ;;  %s2649_s1 = inlined_call_operand.vmem [shape: f32[5,32], index: 1, kind: input, shape index: {}]   ;;  %s2650_s2 = inlined_call_operand.vmem [shape: f32[5,32], index: 2, kind: input, shape index: {}]   ;;  %s2651_s3 = inlined_call_operand.hbm [shape: f32[1,32], index: 3, kind: input, shape index: {}]   ;;  %s2652_s4 = inlined_call_operand.vmem [shape: f32[32,32], index: 4, kind: input, shape index: {}]   ;;  %s2653_s5 = inlined_call_operand.vmem [shape: f32[1,32], index: 5, kind: input, shape index: {}]   ;;  %s2654_s6 = inlined_call_operand.vmem [shape: f32[2,5,2], index: 6, kind: output, shape index: {0}]   ;;  %s2655_s7 = inlined_call_operand.vmem [shape: f32[2,32,2], index: 7, kind: output, shape index: {1}]   ;;  %s2656_s8 = inlined_call_operand.vmem [shape: f32[2,5,32], index: 8, kind: output, shape index: {2}]  }
   0x1   :  { %s27_s28 = sshll.u32 %s2004_s27, 4  ;;  %s28_s28 = int_to_ptr.vmem [resolvable:$true] %s27_s28 }
   0x2   :  { %s1846_s29 = scalar_lea.vmem %s28_s28, 16  ;;  %s1850_s30 = scalar_lea.vmem %s28_s28, 32 }
   0x3   :  { %p1847_p0 = scmp.ne.s32.totalorder %s28_s28, %s1846_s29  ;;  %p1851_p1 = scmp.lt.s32.totalorder %s28_s28, %s28_s28 }
   0x4   :  { %p1852_p2 = scmp.lt.s32.totalorder %s1850_s30, %s1846_s29 }
   0x6   :  { %p1853_p3 = por %p1852_p2, %p1851_p1 }
   0x8   :  { %p1854_p4 = pnand %p1853_p3, %p1847_p0 }
   0xa   :  { %1857 = shalt.err (!%p1854_p4)
}
   0xb   :  { %30 = dma.hbm_to_vmem [thread:$0]  %s2651_s3, 16, %s28_s28, [#allocation3]  }
   0xc   :  { %1930 = dma.done.wait [#allocation3], 16  }
   0xd   :  { %1931 = vsyncadd [#allocation3], 4294967280  ;;  %vm72_vm0 = vcmask 1044480   ;;  %vm65_vm1 = vcmask 39936   ;;  %v2059_v0 = vld [vmem:[%s2648_s0 + $0x10] sm:$0xff]  ;;  %v38_v3 = vld [vmem:[%s2648_s0] sm:$0xff]  ;;  %v42_v36 = vlaneseq }
   0xe   :  { %v2064_v1 = vld [vmem:[%s2648_s0 + $0x18] sm:$0x3f]  ;;  %v2069_v2 = vld [vmem:[%s2649_s1] sm:$0x1f]  ;;  %v39_v4 = vld [vmem:[%s2648_s0 + $0x8] sm:$0x3f]  ;;  %1592 = vmatprep.mubr.msk.f32.mxu0 %vm65_vm1, %v38_v3 }
   0xf   :  { %1590 = vmatprep.subr.msk.mxu0 %vm72_vm0, %v2069_v2  ;;  %v2082_v5 = vld [vmem:[%s2650_s2] sm:$0x1f]  ;;  %vm159_vm2 = vcmask 1046528   ;;  %v160_v6 = vrot.slane %v38_v3, 1  ;;  %v161_v7 = vrot.slane %v39_v4, 1  ;;  %v2098_v9 = vld [vmem:[%s2652_s4 + $0x18] sm:$0xff] }
  0x10   :  { %1591 = vmatpush3.msk.msra.mxu0 %vm72_vm0, %v2069_v2  ;;  %1595 = vmatprep.subr.msk.mxu1 %vm72_vm0, %v2082_v5  ;;  %v2105_v10 = vld [vmem:[%s2652_s4 + $0x10] sm:$0xff]  ;;  %v2112_v11 = vld [vmem:[%s2652_s4 + $0x8] sm:$0xff]  ;;  %v2119_v12 = vld [vmem:[%s2652_s4] sm:$0xff]  ;;  %s2005_s27 = smov 123   ;;  %vm255_vm3 = vcmask 261120   ;;  %vm371_vm4 = vcmask 64512  }
  0x11   :  { %1593 = vmatmul.mubr.msk.f32.vlgmr.msra.gmra.mxu0 %vm65_vm1, %v39_v4  ;;  %1596 = vmatpush3.msk.msra.mxu1 %vm72_vm0, %v2082_v5  ;;  %v162_v8 = vsel %vm159_vm2, %v160_v6, %v161_v7  ;;  %v2124_v13 = vld [vmem:[#allocation2] ss:$0 sm:$0xff]  ;;  %v2148_v37 = vshrl.u32 %v42_v36, 7  ;;  %v2153_v39 = vand.u32 127, %v42_v36  ;;  %v2006_v40 = vmov 0.0  }
  0x12   :  { %1597 = vmatprep.mubr.msk.f32.mxu1 %vm65_vm1, %v162_v8  ;;  %1600 = vmatprep.subr.mxu0 %v2098_v9  ;;  %v2133_v25 = vld [vmem:[%s2653_s5] ss:$0 sm:$0xff]  ;;  %s2201_s5 = smov 0  }
  0x13   :  { %1598 = vmatmul.mubr.msk.f32.vlgmr.msra.gmra.mxu1 %vm65_vm1, %v161_v7  ;;  %1601 = vmatpush3.msra.mxu0 %v2098_v9  ;;  %v2151_v38 = vadd.s32 8, %v2148_v37  ;;  %vm49_vm6 = vcmp.eq.s32.totalorder %v2148_v37, %v2153_v39  ;;  %v2163_v42 = vadd.s32 24, %v2148_v37  ;;  %v2170_v47 = vadd.s32 16, %v2148_v37 }
  0x14   :  { %1602 = vmatprep.subr.mxu0 %v2105_v10  ;;  %469 = vrot.lane.b32.xlu0 %v162_v8, %s2005_s27  ;;  %v2166_v45 = vsel %vm49_vm6, 0.1, %v2006_v40 }
  0x15   :  { %1603 = vmatpush3.msra.mxu0 %v2105_v10  ;;  %vm50_vm5 = vcmp.eq.s32.totalorder %v2151_v38, %v2153_v39  ;;  %vm52_vm7 = vcmp.eq.s32.totalorder %v2163_v42, %v2153_v39  ;;  %vm51_vm8 = vcmp.eq.s32.totalorder %v2170_v47, %v2153_v39 }
  0x16   :  { %1604 = vmatprep.subr.mxu0 %v2112_v11  ;;  %v2160_v41 = vsel %vm50_vm5, 0.1, %v2006_v40  ;;  %v2178_v51 = vsel %vm52_vm7, 0.1, %v2006_v40  ;;  %v2181_v54 = vsel %vm51_vm8, 0.1, %v2006_v40 }
  0x17   :  { %1605 = vmatpush3.msra.mxu0 %v2112_v11 }
  0x18   :  { %1606 = vmatprep.subr.mxu0 %v2119_v12 }
  0x19   :  { %1607 = vmatpush3.msra.mxu0 %v2119_v12 }
  0x86   :  { %v470_v24 = vpop.permute.xlu0 %469 }
  0x87   :  { %1619 = vmatprep.subr.mxu0 %v470_v24 }
  0xd1   :  { %v1594_v14 = vpop.f32.mrf.mxu0 }
  0xd2   :  { %v158_v15 = vadd.f32 %v1594_v14, %v2124_v13 }
  0xd3   :  { %v142_v16 = vpop.f32.mrf.mxu0  ;;  %v1599_v18 = vpop.f32.mrf.mxu1 }
  0xd4   :  { %v157_v17 = vadd.f32 %v2124_v13, %v142_v16  ;;  %v246_v19 = vadd.f32 %v1599_v18, %v158_v15 }
  0xd5   :  { %v236_v20 = vpop.f32.mrf.mxu1 }
  0xd6   :  { %v245_v21 = vadd.f32 %v236_v20, %v157_v17  ;;  %v248_v23 = vmax.f32 %v246_v19, 0.0 }
  0xd8   :  { %v247_v22 = vmax.f32 %v245_v21, 0.0 }
  0xda   :  { %1608 = vmatprep.mubr.msk.f32.mxu0 %vm255_vm3, %v247_v22 }
  0xdb   :  { %1609 = vmatmul.mubr.msk.f32.vlgmr.msra.gmra.mxu0 %vm255_vm3, %v248_v23 }
  0xdc   :  { %1620 = vmatpush3.msra.mxu0 %v470_v24 }
 0x19b   :  { %v1610_v26 = vpop.f32.mrf.mxu0 }
 0x19c   :  { %v2136_v27 = vadd.f32 %v1610_v26, %v2133_v25 }
 0x19d   :  { %v328_v28 = vpop.f32.mrf.mxu0 }
 0x19e   :  { %v338_v29 = vmax.f32 %v2136_v27, 0.0  ;;  %v329_v30 = vadd.f32 %v2133_v25, %v328_v28 }
 0x1a0   :  { %v337_v31 = vmax.f32 %v329_v30, 0.0 }
 0x1a2   :  { %339 = vxpose.xlu0.b32.start.end [1/1] (short) (narrow) %v337_v31, 32  ;;  %1611 = vmatprep.subr.mxu1 %v337_v31 }
 0x1a3   :  { %1612 = vmatpush3.msra.mxu1 %v337_v31 }
 0x21e   :  { %v355_v32 = vpop.trf.xlu0 }
 0x21f   :  { %1613 = vmatprep.mubr.msk.f32.mxu1 %vm371_vm4, %v355_v32  ;;  %1621 = vmatprep.mubr.msk.f32.mxu0 %vm371_vm4, %v355_v32 }
 0x222   :  { %v356_v33 = vpop.trf.xlu0 }
 0x223   :  { %1614 = vmatmul.mubr.msk.f32.vlgmr.msra.gmra.mxu1 %vm371_vm4, %v356_v33  ;;  %1622 = vmatmul.mubr.msk.f32.vlgmr.msra.gmra.mxu0 %vm371_vm4, %v356_v33 }
 0x226   :  { %v357_v34 = vpop.trf.xlu0 }
 0x227   :  { %1616 = vmatprep.mubr.msk.f32.mxu1 %vm371_vm4, %v357_v34  ;;  %1624 = vmatprep.mubr.msk.f32.mxu0 %vm371_vm4, %v357_v34 }
 0x22a   :  { %v358_v35 = vpop.trf.xlu0 }
 0x22b   :  { %1617 = vmatmul.mubr.msk.f32.gmra.mxu1 %vm371_vm4, %v358_v35  ;;  %1625 = vmatmul.mubr.msk.f32.gmra.mxu0 %vm371_vm4, %v358_v35 }
 0x2e3   :  { %v1615_v43 = vpop.f32.mrf.mxu1  ;;  %v1623_v44 = vpop.f32.mrf.mxu0  }
 0x2e4   :  { %v456_v46 = vadd.f32 %v1615_v43, %v2160_v41  }
 0x2e5   :  { %v450_v48 = vpop.f32.mrf.mxu1  ;;  %v538_v49 = vpop.f32.mrf.mxu0  }
 0x2e6   :  { %v451_v50 = vadd.f32 %v450_v48, %v2166_v45  }
 0x2eb   :  { %v1618_v52 = vpop.f32.mrf.mxu1  ;;  %v1626_v53 = vpop.f32.mrf.mxu0  }
 0x2ec   :  { %v466_v55 = vadd.f32 %v1618_v52, %v2178_v51  }
 0x2ed   :  { %v460_v56 = vpop.f32.mrf.mxu1  ;;  %v548_v57 = vpop.f32.mrf.mxu0  }
 0x2ee   :  { %v461_v58 = vadd.f32 %v460_v56, %v2181_v54  }
 0x2ef LB: > { %v571_v59 = vstv %s1966_s5  ;;  %vm606_vm14 = vcmask 15360   ;;  %s562_s5 = sadd.s32 1, %s1966_s5   ;;  %s1966_s5 = sphi %s2201_s5, %s562_s5   ;;  %v1962_v50 = vphi %v451_v50, %v658_v50   ;;  %v1958_v46 = vphi %v456_v46, %v659_v46   ;;  %v1954_v58 = vphi %v461_v58, %v660_v58   ;;  %v1950_v55 = vphi %v466_v55, %v661_v55   ;;  %v1946_v49 = vphi %v538_v49, %v2670_v49   ;;  %v1942_v44 = vphi %v1623_v44, %v2669_v44   ;;  %v1938_v57 = vphi %v548_v57, %v2668_v57   ;;  %v1934_v53 = vphi %v1626_v53, %v2667_v53  }
 0x2f0   : > { %vm2232_vm9 = vcmp.eq.s32.totalorder %v2148_v37, %v571_v59  ;;  %vm2237_vm10 = vcmp.eq.s32.totalorder %v2151_v38, %v571_v59  ;;  %vm2242_vm11 = vcmp.eq.s32.totalorder %v2170_v47, %v571_v59  ;;  %vm2247_vm12 = vcmp.eq.s32.totalorder %v2163_v42, %v571_v59  ;;  %p559_p5 = scmp.ge.s32.totalorder %s562_s5, 32  }
 0x2f1   : > { %vm2252_vm13 = vcmp.eq.s32.totalorder %v2153_v39, %v571_v59  ;;  %v585_v4 = vsel %vm2232_vm9, %v1962_v50, 0.0  ;;  %v586_v6 = vsel %vm2237_vm10, %v1958_v46, 0.0  ;;  %v587_v7 = vsel %vm2242_vm11, %v1954_v58, 0.0  ;;  %1627 = vmatprep.subr.mxu1 (%p559_p5), %v2006_v40  ;;  %1643 = vmatprep.subr.msk.mxu0 (%p559_p5), %vm72_vm0, %v2082_v5  ;;  %s2456_s18 = smov (%p559_p5), 0  }
 0x2f2   : > { %v588_v8 = vsel %vm2247_vm12, %v1950_v55, 0.0  ;;  %v589_v14 = vsel %vm255_vm3, %v585_v4, 0.0  ;;  %v590_v15 = vsel %vm255_vm3, %v586_v6, 0.0  ;;  %v592_v16 = vsel %vm255_vm3, %v587_v7, 0.0  ;;  %1644 = vmatpush3.msk.msra.mxu0 (%p559_p5), %vm72_vm0, %v2082_v5 }
 0x2f3   : > { %v591_v17 = vadd.f32 %v590_v15, %v589_v14  ;;  %v631_v18 = vsel %vm2252_vm13, %v1958_v46, 0.0  ;;  %v594_v19 = vsel %vm255_vm3, %v588_v8, 0.0  ;;  %v632_v21 = vsel %vm2252_vm13, %v1954_v58, 0.0 }
 0x2f4   : > { %v637_v20 = vsel %vm255_vm3, %v631_v18, 0.0  ;;  %v640_v23 = vsel %vm255_vm3, %v632_v21, 0.0  ;;  %v630_v35 = vsel %vm2252_vm13, %v1962_v50, 0.0  ;;  %v633_v48 = vsel %vm2252_vm13, %v1950_v55, 0.0 }
 0x2f5   : > { %v593_v22 = vadd.f32 %v592_v16, %v591_v17  ;;  %638 = vadd.xlane.f32.xlu1 %v637_v20  ;;  %v634_v43 = vsel %vm255_vm3, %v630_v35, 0.0  ;;  %v643_v52 = vsel %vm255_vm3, %v633_v48, 0.0  ;;  %v602_v56 = vsel %vm2232_vm9, %v1946_v49, 0.0 }
 0x2f6   : > { %v603_v59 = vsel %vm2237_vm10, %v1942_v44, 0.0  ;;  %v607_v4 = vsel %vm606_vm14, %v602_v56, 0.0  ;;  %v604_v3 = vsel %vm2242_vm11, %v1938_v57, 0.0  ;;  %v605_v14 = vsel %vm2247_vm12, %v1934_v53, 0.0 }
 0x2f7   : > { %v595_v24 = vadd.f32 %v594_v19, %v593_v22  ;;  %v608_v6 = vsel %vm606_vm14, %v603_v59, 0.0  ;;  %v610_v8 = vsel %vm606_vm14, %v604_v3, 0.0  ;;  %v612_v16 = vsel %vm606_vm14, %v605_v14, 0.0 }
 0x2f8   : > { %v609_v7 = vadd.f32 %v608_v6, %v607_v4  ;;  %vm754_vm15 = vcmask (%p559_p5), 258048   ;;  %vm2007_vm5 = vmmov (%p559_p5), 0  }
 0x2f9   : > { %v596_v26 = vrot.slane %v595_v24, 4  ;;  %641 = vadd.xlane.f32.xlu1 %v640_v23  ;;  %1635 = vmatprep.mubr.msk.f32.mxu1 (%p559_p5), %vm2007_vm5, %v2006_v40  ;;  %755 = vst.msk [vmem:[%s2656_s8] sm:$0x1f] (%p559_p5), %vm754_vm15, %v338_v29 }
 0x2fa   : > { %v611_v15 = vadd.f32 %v610_v8, %v609_v7 }
 0x2fb   : > { %v597_v28 = vadd.f32 %v596_v26, %v595_v24 }
 0x2fc   : > { %v613_v17 = vadd.f32 %v612_v16, %v611_v15 }
 0x2fd   : > { %v598_v30 = vrot.slane %v597_v28, 2 }
 0x2fe   : > { %v614_v18 = vrot.slane %v613_v17, 4 }
 0x2ff   : > { %v599_v31 = vadd.f32 %v598_v30, %v597_v28 }
 0x300   : > { %v615_v19 = vadd.f32 %v614_v18, %v613_v17 }
 0x301   : > { %v600_v32 = vrot.slane %v599_v31, 1 }
 0x302   : > { %v616_v20 = vrot.slane %v615_v19, 2 }
 0x303   : > { %v601_v33 = vadd.f32 %v600_v32, %v599_v31 }
 0x304   : > { %v617_v22 = vadd.f32 %v616_v20, %v615_v19 }
 0x305   : > { %v620_v34 = vsel %vm2252_vm13, %v601_v33, 0.0 }
 0x306   : > { %v621_v36 = vsel %vm255_vm3, %v620_v34, 0.0  ;;  %v618_v26 = vrot.slane %v617_v22, 1 }
 0x307   : > { %622 = vadd.xlane.f32.xlu0 %v621_v36 }
 0x308   : > { %v619_v28 = vadd.f32 %v618_v26, %v617_v22 }
 0x30b   : > { %635 = vadd.xlane.f32.xlu0 %v634_v43 }
 0x30f   : > { %644 = vadd.xlane.f32.xlu0 %v643_v52 }
 0x37e   : > { %v639_v23 = vpop.xlane.xlu1 %638 }
 0x37f   : > { %v647_v48 = vsel %vm2237_vm10, 0.0, %v639_v23 }
 0x382   : > { %v642_v30 = vpop.xlane.xlu1 %641 }
 0x383   : > { %v648_v36 = vsel %vm2242_vm11, 0.0, %v642_v30 }
 0x390   : > { %v623_v21 = vpop.xlane.xlu0 %622 }
 0x391   : > { %1834 = vrcp.f32 %v623_v21 }
 0x394   : > { %v636_v24 = vpop.xlane.xlu0 %635 }
 0x395   : > { %v646_v52 = vsel %vm2232_vm9, 0.0, %v636_v24 }
 0x398   : > { %v645_v31 = vpop.xlane.xlu0 %644 }
 0x399   : > { %v649_v43 = vsel %vm2247_vm12, 0.0, %v645_v31 }
 0x39e   : > { %v1835_v32 = vpop.eup %1834 }
 0x39f   : > { %v626_v34 = vmul.f32 %v1835_v32, %v601_v33  ;;  %v627_v35 = vmul.f32 %v1835_v32, %v619_v28 }
 0x3a1   : > { %v651_v56 = vmul.f32 %v647_v48, %v626_v34  ;;  %v663_v59 = vmul.f32 %v647_v48, %v627_v35  ;;  %v650_v4 = vmul.f32 %v646_v52, %v626_v34  ;;  %v662_v6 = vmul.f32 %v646_v52, %v627_v35 }
 0x3a2   : > { %v652_v3 = vmul.f32 %v648_v36, %v626_v34  ;;  %v664_v7 = vmul.f32 %v648_v36, %v627_v35  ;;  %v653_v33 = vmul.f32 %v649_v43, %v626_v34  ;;  %v665_v8 = vmul.f32 %v649_v43, %v627_v35 }
 0x3a3   : > { %v655_v14 = vsub.f32 %v1958_v46, %v651_v56  ;;  %v667_v15 = vsub.f32 %v1942_v44, %v663_v59  ;;  %v654_v16 = vsub.f32 %v1962_v50, %v650_v4  ;;  %v666_v17 = vsub.f32 %v1946_v49, %v662_v6  ;;  %561 = sbr.rel (!%p559_p5) target bundleno = 751 (0x2ef), region = 81 }
 0x3a4   : > { %v656_v18 = vsub.f32 %v1954_v58, %v652_v3  ;;  %v668_v19 = vsub.f32 %v1938_v57, %v664_v7  ;;  %v657_v20 = vsub.f32 %v1950_v55, %v653_v33  ;;  %v669_v21 = vsub.f32 %v1934_v53, %v665_v8 }
 0x3a5   : > { %v659_v46 = vsel %vm2237_vm10, %v626_v34, %v655_v14   ;;  %v671_v22 = vsel %vm2237_vm10, %v627_v35, %v667_v15   ;;  %v658_v50 = vsel %vm2232_vm9, %v626_v34, %v654_v16   ;;  %v670_v23 = vsel %vm2232_vm9, %v627_v35, %v666_v17  }
 0x3a6   : > { %v660_v58 = vsel %vm2242_vm11, %v626_v34, %v656_v18   ;;  %v672_v24 = vsel %vm2242_vm11, %v627_v35, %v668_v19   ;;  %v661_v55 = vsel %vm2247_vm12, %v626_v34, %v657_v20   ;;  %v673_v26 = vsel %vm2247_vm12, %v627_v35, %v669_v21   ;;  %750 = vst.msk [vmem:[%s2655_s7] sm:$0xff] (%p559_p5), %vm606_vm14, %v670_v23 }
 0x3a7   : > { %v2667_v53 = vmov %v673_v26  ;;  %v2668_v57 = vmov %v672_v24  ;;  %v2669_v44 = vmov %v671_v22  ;;  %v2670_v49 = vmov %v670_v23  ;;  %751 = vst.msk [vmem:[%s2655_s7 + $0x8] sm:$0xff] (%p559_p5), %vm606_vm14, %v671_v22  ;;  %752 = vst.msk [vmem:[%s2655_s7 + $0x10] sm:$0xff] (%p559_p5), %vm606_vm14, %v672_v24  ;;  %1628 = vmatpush3.msra.mxu1 (%p559_p5), %v673_v26 }
 0x3a8   :  { %753 = vst.msk [vmem:[%s2655_s7 + $0x18] sm:$0xff] %vm606_vm14, %v673_v26  ;;  %v839_v44 = vrot.slane %v2059_v0, 1  ;;  %v840_v46 = vrot.slane %v2064_v1, 1  ;;  %1629 = vmatprep.subr.mxu1 %v2006_v40 }
 0x3a9   :  { %1630 = vmatpush3.msra.mxu1 %v672_v24 }
 0x3aa   :  { %v841_v49 = vsel %vm159_vm2, %v839_v44, %v840_v46  ;;  %1631 = vmatprep.subr.mxu1 %v2006_v40 }
 0x3ab   :  { %1645 = vmatprep.mubr.msk.f32.mxu0 %vm65_vm1, %v841_v49  ;;  %1632 = vmatpush3.msra.mxu1 %v671_v22 }
 0x3ac   :  { %1646 = vmatmul.mubr.msk.f32.vlgmr.msra.gmra.mxu0 %vm65_vm1, %v840_v46  ;;  %1137 = vrot.lane.b32.xlu0 %v841_v49, %s2005_s27 }
 0x3ad   :  { %1633 = vmatprep.subr.mxu1 %v2006_v40 }
 0x3ae   :  { %1634 = vmatpush3.msra.mxu1 %v670_v23 }
 0x3af   :  { %1636 = vmatmul.mubr.msk.f32.vlgmr.msra.gmra.mxu1 %vm255_vm3, %v338_v29  ;;  %1638 = vmatprep.subr.msk.mxu1 %vm72_vm0, %v2069_v2 }
 0x3b0   :  { %1639 = vmatpush3.msk.msra.mxu1 %vm72_vm0, %v2069_v2  ;;  %1640 = vmatprep.mubr.msk.f32.mxu1 %vm65_vm1, %v2059_v0  ;;  %vm747_vm0 = vcmask 12288  }
 0x3b1   :  { %1648 = vmatprep.subr.mxu1 %v2098_v9 }
 0x3b3   :  { %1641 = vmatmul.mubr.msk.f32.vlgmr.msra.gmra.mxu1 %vm65_vm1, %v2064_v1 }
 0x3b4   :  { %1649 = vmatpush3.msra.mxu1 %v2098_v9 }
 0x3b5   :  { %1650 = vmatprep.subr.mxu1 %v2105_v10 }
 0x3b6   :  { %1651 = vmatpush3.msra.mxu1 %v2105_v10 }
 0x3b7   :  { %1652 = vmatprep.subr.mxu1 %v2112_v11 }
 0x3b8   :  { %1653 = vmatpush3.msra.mxu1 %v2112_v11 }
 0x3b9   :  { %1654 = vmatprep.subr.mxu1 %v2119_v12 }
 0x3ba   :  { %1655 = vmatpush3.msra.mxu1 %v2119_v12 }
 0x41e   :  { %v1138_v55 = vpop.permute.xlu0 %1137 }
 0x41f   :  { %1667 = vmatprep.subr.mxu1 %v1138_v55 }
 0x46c   :  { %v1647_v5 = vpop.f32.mrf.mxu0 }
 0x46e   :  { %v912_v29 = vpop.f32.mrf.mxu0 }
 0x46f   :  { %v743_v0 = vpop.f32.mrf.mxu1 }
 0x470   :  { %748 = vst.msk [vmem:[%s2654_s6] sm:$0x1f] %vm747_vm0, %v743_v0 }
 0x471   :  { %v1637_v1 = vpop.f32.mrf.mxu1 }
 0x473   :  { %v1642_v2 = vpop.f32.mrf.mxu1 }
 0x474   :  { %v838_v9 = vadd.f32 %v1642_v2, %v2124_v13 }
 0x475   :  { %v828_v10 = vpop.f32.mrf.mxu1 }
 0x476   :  { %v837_v27 = vadd.f32 %v2124_v13, %v828_v10  ;;  %v922_v11 = vadd.f32 %v1647_v5, %v838_v9 }
 0x478   :  { %v921_v50 = vadd.f32 %v912_v29, %v837_v27  ;;  %v924_v12 = vmax.f32 %v922_v11, 0.0 }
 0x47a   :  { %v923_v53 = vmax.f32 %v921_v50, 0.0 }
 0x47c   :  { %1656 = vmatprep.mubr.msk.f32.mxu1 %vm255_vm3, %v923_v53 }
 0x47d   :  { %1657 = vmatmul.mubr.msk.f32.vlgmr.msra.gmra.mxu1 %vm255_vm3, %v924_v12 }
 0x47e   :  { %1668 = vmatpush3.msra.mxu1 %v1138_v55 }
 0x53d   :  { %v1658_v57 = vpop.f32.mrf.mxu1 }
 0x53e   :  { %v2424_v58 = vadd.f32 %v1658_v57, %v2133_v25 }
 0x53f   :  { %v997_v60 = vpop.f32.mrf.mxu1 }
 0x540   :  { %v1007_v61 = vmax.f32 %v2424_v58, 0.0  ;;  %v998_v13 = vadd.f32 %v2133_v25, %v997_v60 }
 0x542   :  { %v1006_v62 = vmax.f32 %v998_v13, 0.0 }
 0x544   :  { %1008 = vxpose.xlu0.b32.start.end [1/1] (short) (narrow) %v1006_v62, 32  ;;  %1659 = vmatprep.subr.mxu0 %v1006_v62 }
 0x545   :  { %1660 = vmatpush3.msra.mxu0 %v1006_v62 }
 0x5c0   :  { %v1024_v63 = vpop.trf.xlu0 }
 0x5c1   :  { %1661 = vmatprep.mubr.msk.f32.mxu0 %vm371_vm4, %v1024_v63  ;;  %1669 = vmatprep.mubr.msk.f32.mxu1 %vm371_vm4, %v1024_v63 }
 0x5c4   :  { %v1025_v28 = vpop.trf.xlu0 }
 0x5c5   :  { %1662 = vmatmul.mubr.msk.f32.vlgmr.msra.gmra.mxu0 %vm371_vm4, %v1025_v28  ;;  %1670 = vmatmul.mubr.msk.f32.vlgmr.msra.gmra.mxu1 %vm371_vm4, %v1025_v28 }
 0x5c8   :  { %v1026_v30 = vpop.trf.xlu0 }
 0x5c9   :  { %1664 = vmatprep.mubr.msk.f32.mxu0 %vm371_vm4, %v1026_v30  ;;  %1672 = vmatprep.mubr.msk.f32.mxu1 %vm371_vm4, %v1026_v30 }
 0x5cc   :  { %v1027_v25 = vpop.trf.xlu0 }
 0x5cd   :  { %1665 = vmatmul.mubr.msk.f32.gmra.mxu0 %vm371_vm4, %v1027_v25  ;;  %1673 = vmatmul.mubr.msk.f32.gmra.mxu1 %vm371_vm4, %v1027_v25 }
 0x685   :  { %v1663_v31 = vpop.f32.mrf.mxu0  ;;  %v1671_v32 = vpop.f32.mrf.mxu1  }
 0x686   :  { %v1124_v34 = vadd.f32 %v1663_v31, %v2160_v41  }
 0x687   :  { %v1118_v35 = vpop.f32.mrf.mxu0  ;;  %v1206_v36 = vpop.f32.mrf.mxu1  }
 0x688   :  { %v1119_v43 = vadd.f32 %v1118_v35, %v2166_v45  }
 0x68d   :  { %v1666_v48 = vpop.f32.mrf.mxu0  ;;  %v1674_v52 = vpop.f32.mrf.mxu1  }
 0x68e   :  { %v1134_v56 = vadd.f32 %v1666_v48, %v2178_v51  }
 0x68f   :  { %v1128_v59 = vpop.f32.mrf.mxu0  ;;  %v1216_v4 = vpop.f32.mrf.mxu1  }
 0x690   :  { %v1129_v6 = vadd.f32 %v1128_v59, %v2181_v54  }
 0x691 LB: > { %v1239_v41 = vstv %s2002_s18  ;;  %s1230_s18 = sadd.s32 1, %s2002_s18   ;;  %s2002_s18 = sphi %s2456_s18, %s1230_s18   ;;  %v1998_v43 = vphi %v1119_v43, %v1325_v43   ;;  %v1994_v34 = vphi %v1124_v34, %v1326_v34   ;;  %v1990_v6 = vphi %v1129_v6, %v1327_v6   ;;  %v1986_v56 = vphi %v1134_v56, %v1328_v56   ;;  %v1982_v36 = vphi %v1206_v36, %v2684_v36   ;;  %v1978_v32 = vphi %v1671_v32, %v2683_v32   ;;  %v1974_v4 = vphi %v1216_v4, %v2682_v4   ;;  %v1970_v52 = vphi %v1674_v52, %v2681_v52  }
 0x692   : > { %vm2487_vm1 = vcmp.eq.s32.totalorder %v2148_v37, %v1239_v41  ;;  %vm2492_vm2 = vcmp.eq.s32.totalorder %v2151_v38, %v1239_v41  ;;  %vm2497_vm4 = vcmp.eq.s32.totalorder %v2170_v47, %v1239_v41  ;;  %vm2502_vm6 = vcmp.eq.s32.totalorder %v2163_v42, %v1239_v41  ;;  %p1227_p6 = scmp.ge.s32.totalorder %s1230_s18, 32  }
 0x693   : > { %vm2507_vm7 = vcmp.eq.s32.totalorder %v2153_v39, %v1239_v41  ;;  %v1253_v33 = vsel %vm2487_vm1, %v1998_v43, 0.0  ;;  %v1254_v8 = vsel %vm2492_vm2, %v1994_v34, 0.0  ;;  %v1255_v14 = vsel %vm2497_vm4, %v1990_v6, 0.0  ;;  %1675 = vmatprep.subr.mxu0 (%p1227_p6), %v2006_v40  ;;  %1683 = vmatprep.mubr.msk.f32.mxu0 (%p1227_p6), %vm2007_vm5, %v2006_v40  ;;  %1535 = vst.msk [vmem:[%s2656_s8 + $0x8] sm:$0x1f] (%p1227_p6), %vm754_vm15, %v1007_v61 }
 0x694   : > { %v1256_v15 = vsel %vm2502_vm6, %v1986_v56, 0.0  ;;  %v1257_v16 = vsel %vm255_vm3, %v1253_v33, 0.0  ;;  %v1258_v17 = vsel %vm255_vm3, %v1254_v8, 0.0  ;;  %v1260_v18 = vsel %vm255_vm3, %v1255_v14, 0.0 }
 0x695   : > { %v1259_v19 = vadd.f32 %v1258_v17, %v1257_v16  ;;  %v1298_v20 = vsel %vm2507_vm7, %v1994_v34, 0.0  ;;  %v1262_v21 = vsel %vm255_vm3, %v1256_v15, 0.0  ;;  %v1299_v23 = vsel %vm2507_vm7, %v1990_v6, 0.0 }
 0x696   : > { %v1304_v22 = vsel %vm255_vm3, %v1298_v20, 0.0  ;;  %v1307_v26 = vsel %vm255_vm3, %v1299_v23, 0.0  ;;  %v1297_v10 = vsel %vm2507_vm7, %v1998_v43, 0.0  ;;  %v1300_v29 = vsel %vm2507_vm7, %v1986_v56, 0.0 }
 0x697   : > { %v1261_v24 = vadd.f32 %v1260_v18, %v1259_v19  ;;  %1305 = vadd.xlane.f32.xlu1 %v1304_v22  ;;  %v1301_v11 = vsel %vm255_vm3, %v1297_v10, 0.0  ;;  %v1310_v50 = vsel %vm255_vm3, %v1300_v29, 0.0  ;;  %v1270_v53 = vsel %vm2487_vm1, %v1982_v36, 0.0 }
 0x698   : > { %v1271_v12 = vsel %vm2492_vm2, %v1978_v32, 0.0  ;;  %v1274_v55 = vsel %vm606_vm14, %v1270_v53, 0.0  ;;  %v1272_v60 = vsel %vm2497_vm4, %v1974_v4, 0.0  ;;  %v1273_v63 = vsel %vm2502_vm6, %v1970_v52, 0.0 }
 0x699   : > { %v1263_v44 = vadd.f32 %v1262_v21, %v1261_v24  ;;  %v1275_v57 = vsel %vm606_vm14, %v1271_v12, 0.0  ;;  %v1277_v62 = vsel %vm606_vm14, %v1272_v60, 0.0  ;;  %v1279_v30 = vsel %vm606_vm14, %v1273_v63, 0.0 }
 0x69a   : > { %v1276_v13 = vadd.f32 %v1275_v57, %v1274_v55 }
 0x69b   : > { %v1264_v46 = vrot.slane %v1263_v44, 4  ;;  %1308 = vadd.xlane.f32.xlu1 %v1307_v26 }
 0x69c   : > { %v1278_v28 = vadd.f32 %v1277_v62, %v1276_v13 }
 0x69d   : > { %v1265_v49 = vadd.f32 %v1264_v46, %v1263_v44 }
 0x69e   : > { %v1280_v25 = vadd.f32 %v1279_v30, %v1278_v28 }
 0x69f   : > { %v1266_v0 = vrot.slane %v1265_v49, 2 }
 0x6a0   : > { %v1281_v31 = vrot.slane %v1280_v25, 4 }
 0x6a1   : > { %v1267_v1 = vadd.f32 %v1266_v0, %v1265_v49 }
 0x6a2   : > { %v1282_v35 = vadd.f32 %v1281_v31, %v1280_v25 }
 0x6a3   : > { %v1268_v2 = vrot.slane %v1267_v1, 1 }
 0x6a4   : > { %v1283_v48 = vrot.slane %v1282_v35, 2 }
 0x6a5   : > { %v1269_v5 = vadd.f32 %v1268_v2, %v1267_v1 }
 0x6a6   : > { %v1284_v41 = vadd.f32 %v1283_v48, %v1282_v35 }
 0x6a7   : > { %v1287_v9 = vsel %vm2507_vm7, %v1269_v5, 0.0 }
 0x6a8   : > { %v1288_v27 = vsel %vm255_vm3, %v1287_v9, 0.0  ;;  %v1285_v8 = vrot.slane %v1284_v41, 1 }
 0x6a9   : > { %1289 = vadd.xlane.f32.xlu0 %v1288_v27 }
 0x6aa   : > { %v1286_v14 = vadd.f32 %v1285_v8, %v1284_v41 }
 0x6ad   : > { %1302 = vadd.xlane.f32.xlu0 %v1301_v11 }
 0x6b1   : > { %1311 = vadd.xlane.f32.xlu0 %v1310_v50 }
 0x720   : > { %v1306_v7 = vpop.xlane.xlu1 %1305 }
 0x721   : > { %v1314_v22 = vsel %vm2492_vm2, 0.0, %v1306_v7 }
 0x724   : > { %v1309_v15 = vpop.xlane.xlu1 %1308 }
 0x725   : > { %v1315_v20 = vsel %vm2497_vm4, 0.0, %v1309_v15 }
 0x732   : > { %v1290_v59 = vpop.xlane.xlu0 %1289 }
 0x733   : > { %1836 = vrcp.f32 %v1290_v59 }
 0x736   : > { %v1303_v33 = vpop.xlane.xlu0 %1302 }
 0x737   : > { %v1313_v23 = vsel %vm2487_vm1, 0.0, %v1303_v33 }
 0x73a   : > { %v1312_v16 = vpop.xlane.xlu0 %1311 }
 0x73b   : > { %v1316_v21 = vsel %vm2502_vm6, 0.0, %v1312_v16 }
 0x740   : > { %v1837_v17 = vpop.eup %1836 }
 0x741   : > { %v1293_v18 = vmul.f32 %v1837_v17, %v1269_v5  ;;  %v1294_v19 = vmul.f32 %v1837_v17, %v1286_v14 }
 0x743   : > { %v1318_v24 = vmul.f32 %v1314_v22, %v1293_v18  ;;  %v1330_v26 = vmul.f32 %v1314_v22, %v1294_v19  ;;  %v1317_v44 = vmul.f32 %v1313_v23, %v1293_v18  ;;  %v1329_v46 = vmul.f32 %v1313_v23, %v1294_v19 }
 0x744   : > { %v1319_v49 = vmul.f32 %v1315_v20, %v1293_v18  ;;  %v1331_v0 = vmul.f32 %v1315_v20, %v1294_v19  ;;  %v1320_v1 = vmul.f32 %v1316_v21, %v1293_v18  ;;  %v1332_v2 = vmul.f32 %v1316_v21, %v1294_v19 }
 0x745   : > { %v1322_v5 = vsub.f32 %v1994_v34, %v1318_v24  ;;  %v1334_v9 = vsub.f32 %v1978_v32, %v1330_v26  ;;  %v1321_v10 = vsub.f32 %v1998_v43, %v1317_v44  ;;  %v1333_v27 = vsub.f32 %v1982_v36, %v1329_v46  ;;  %1229 = sbr.rel (!%p1227_p6) target bundleno = 1681 (0x691), region = 92 }
 0x746   : > { %v1323_v11 = vsub.f32 %v1990_v6, %v1319_v49  ;;  %v1335_v29 = vsub.f32 %v1974_v4, %v1331_v0  ;;  %v1324_v50 = vsub.f32 %v1986_v56, %v1320_v1  ;;  %v1336_v53 = vsub.f32 %v1970_v52, %v1332_v2 }
 0x747   : > { %v1326_v34 = vsel %vm2492_vm2, %v1293_v18, %v1322_v5   ;;  %v1338_v12 = vsel %vm2492_vm2, %v1294_v19, %v1334_v9   ;;  %v1325_v43 = vsel %vm2487_vm1, %v1293_v18, %v1321_v10   ;;  %v1337_v55 = vsel %vm2487_vm1, %v1294_v19, %v1333_v27  }
 0x748   : > { %v1327_v6 = vsel %vm2497_vm4, %v1293_v18, %v1323_v11   ;;  %v1339_v57 = vsel %vm2497_vm4, %v1294_v19, %v1335_v29   ;;  %v1328_v56 = vsel %vm2502_vm6, %v1293_v18, %v1324_v50   ;;  %v1340_v60 = vsel %vm2502_vm6, %v1294_v19, %v1336_v53   ;;  %1531 = vst.msk [vmem:[%s2655_s7 + $0x20] sm:$0xff] (%p1227_p6), %vm606_vm14, %v1337_v55 }
 0x749   : > { %v2681_v52 = vmov %v1340_v60  ;;  %v2682_v4 = vmov %v1339_v57  ;;  %v2683_v32 = vmov %v1338_v12  ;;  %v2684_v36 = vmov %v1337_v55  ;;  %1532 = vst.msk [vmem:[%s2655_s7 + $0x28] sm:$0xff] (%p1227_p6), %vm606_vm14, %v1338_v12  ;;  %1533 = vst.msk [vmem:[%s2655_s7 + $0x30] sm:$0xff] (%p1227_p6), %vm606_vm14, %v1339_v57  ;;  %1676 = vmatpush3.msra.mxu0 (%p1227_p6), %v1340_v60 }
 0x74a   :  { %1534 = vst.msk [vmem:[%s2655_s7 + $0x38] sm:$0xff] %vm606_vm14, %v1340_v60  ;;  %1677 = vmatprep.subr.mxu0 %v2006_v40 }
 0x74b   :  { %1678 = vmatpush3.msra.mxu0 %v1339_v57 }
 0x74c   :  { %1679 = vmatprep.subr.mxu0 %v2006_v40 }
 0x74d   :  { %1680 = vmatpush3.msra.mxu0 %v1338_v12 }
 0x74e   :  { %1681 = vmatprep.subr.mxu0 %v2006_v40 }
 0x74f   :  { %1682 = vmatpush3.msra.mxu0 %v1337_v55 }
 0x750   :  { %1684 = vmatmul.mubr.msk.f32.vlgmr.msra.gmra.mxu0 %vm255_vm3, %v1007_v61 }
 0x810   :  { %v1410_v37 = vpop.f32.mrf.mxu0 }
 0x811   :  { %1530 = vst.msk [vmem:[%s2654_s6 + $0x8] sm:$0x1f] %vm747_vm0, %v1410_v37 }
 0x812   :  { %v1685_v38 = vpop.f32.mrf.mxu0 }
 0x813   :  { %1435 = vsyncpa [#allocation3], 1 }

</bundles_post_ra>
